<compile_context>
chip_gen: v5e
topology: v5e:2x2
jax: 0.10.0
libtpu: 0.0.40
codegen_flags: <defaults>
</compile_context>

<pallas_src>
import functools

import jax
import jax.numpy as jnp
import numpy as np
from jax.experimental import pallas as pl
from jax.experimental.pallas import tpu as pltpu


# ---------------------------------------------------------------------------
# Stage 1: sequence max-pool (pool_type='max', torch.max(..., dim=1).values)
# ---------------------------------------------------------------------------
def _pool_max_kernel(x_ref, o_ref):
    j = pl.program_id(1)                                          # seq tile
    # Widen each tile before the reduce (exact for max, safe on v5e's VPU).
    blk_max = jnp.max(x_ref[...].astype(jnp.float32), axis=1)     # (bB, D)

    @pl.when(j == 0)
    def _init():
        o_ref[...] = blk_max

    @pl.when(j > 0)
    def _accum():
        o_ref[...] = jnp.maximum(o_ref[...], blk_max)


def _pick_batch_tile(batch):
    # >1 batch tile lets the "parallel" axis use both TensorCores on v7x.
    if batch > 8 and batch % 8 == 0:
        return 8
    return batch


def _pick_seq_tile(seq, batch_tile, feat, itemsize,
                   budget_bytes=4 * 1024 * 1024):
    """Largest seq tile (multiple of 8 dividing `seq`) whose double-buffered
    input block fits `budget_bytes` (sized with headroom for v7x's 64 MiB
    physical / 32 MiB default-scoped VMEM)."""
    max_elems = max(8, budget_bytes // (2 * batch_tile * feat * itemsize))
    max_tile = max(8, (max_elems // 8) * 8)
    if seq <= max_tile:
        return seq
    divisors = [t for t in range(8, max_tile + 1, 8) if seq % t == 0]
    return divisors[-1] if divisors else seq


def _max_pool_seq(x, seq_tile=None):
    batch, seq, feat = x.shape
    b_tile = _pick_batch_tile(batch)
    if seq_tile is not None and seq % seq_tile == 0 and (
            seq_tile % 8 == 0 or seq_tile == seq):
        s_tile = seq_tile
    else:
        s_tile = _pick_seq_tile(seq, b_tile, feat, x.dtype.itemsize)
    grid = (batch // b_tile, seq // s_tile)

    return pl.pallas_call(
        _pool_max_kernel,
        out_shape=jax.ShapeDtypeStruct((batch, feat), jnp.float32),
        grid_spec=pltpu.PrefetchScalarGridSpec(
            num_scalar_prefetch=0,
            grid=grid,
            in_specs=[pl.BlockSpec((b_tile, s_tile, feat),
                                   lambda i, j: (i, j, 0))],
            out_specs=pl.BlockSpec((b_tile, feat), lambda i, j: (i, 0)),
        ),
        compiler_params=pltpu.CompilerParams(
            dimension_semantics=("parallel", "arbitrary"),
            vmem_limit_bytes=32 * 1024 * 1024,
        ),
    )(x)


# ---------------------------------------------------------------------------
# Stage 2: shared fc projection + similarity logits + CLIP InfoNCE loss
# ---------------------------------------------------------------------------
def _epilogue_kernel(x_ref, w_ref, b_ref, scale_ref, lv_ref, loss_ref):
    x = x_ref[...]                       # (2B, D) pooled [video ; text], f32
    w = w_ref[...]                       # (D, sd_dim)  pre-transposed weight
    b = b_ref[...]                       # (1, sd_dim)

    # One MXU pass for both projections (shared fc).
    proj = jnp.dot(x, w, preferred_element_type=jnp.float32) + b  # (2B, sd)
    bsz = x.shape[0] // 2
    v_sd = proj[:bsz]
    t_sd = proj[bsz:]

    scale = scale_ref[0, 0]              # min(exp(logit_scale), 100) from SMEM

    # Single similarity matmul; logits_per_text_sd == logits_v.T (wrapper).
    logits_v = jax.lax.dot_general(
        v_sd, t_sd, (((1,), (1,)), ((), ())),
        preferred_element_type=jnp.float32) * scale               # (B, B)
    lv_ref[...] = logits_v

    # TODO(synk): ClipInfoCELoss is not defined in the provided source; the
    # standard CLIP symmetric cross-entropy with arange labels (type='0') is
    # implemented, with both terms derived from logits_v (shared diagonal).
    row = jax.lax.broadcasted_iota(jnp.int32, (bsz, bsz), 0)
    col = jax.lax.broadcasted_iota(jnp.int32, (bsz, bsz), 1)
    eye = (row == col).astype(jnp.float32)
    diag_mean = jnp.sum(logits_v * eye) / bsz

    m_r = jnp.max(logits_v, axis=1, keepdims=True)                # (B, 1)
    lse_r = jnp.log(jnp.sum(jnp.exp(logits_v - m_r), axis=1,
                            keepdims=True)) + m_r
    m_c = jnp.max(logits_v, axis=0, keepdims=True)                # (1, B)
    lse_c = jnp.log(jnp.sum(jnp.exp(logits_v - m_c), axis=0,
                            keepdims=True)) + m_c

    loss_v = jnp.sum(lse_r) / bsz - diag_mean
    loss_t = jnp.sum(lse_c) / bsz - diag_mean
    loss = 0.5 * (loss_v + loss_t)
    # Single (1,1) store is negligible; kept in VMEM for lowering safety.
    loss_ref[...] = jnp.full((1, 1), loss, dtype=jnp.float32)


def _epilogue(x_pool, w_t, bias, scale):
    bsz = x_pool.shape[0] // 2
    vmem = pltpu.MemorySpace.VMEM
    smem = pltpu.MemorySpace.SMEM
    return pl.pallas_call(
        _epilogue_kernel,
        out_shape=(jax.ShapeDtypeStruct((bsz, bsz), jnp.float32),
                   jax.ShapeDtypeStruct((1, 1), jnp.float32)),
        in_specs=[pl.BlockSpec(memory_space=vmem),
                  pl.BlockSpec(memory_space=vmem),
                  pl.BlockSpec(memory_space=vmem),
                  pl.BlockSpec(memory_space=smem)],
        out_specs=(pl.BlockSpec(memory_space=vmem),
                   pl.BlockSpec(memory_space=vmem)),
    )(x_pool, w_t, bias, scale)


# ---------------------------------------------------------------------------
# Wrapper (matches SST_network_ablation.forward with pool_type='max')
# ---------------------------------------------------------------------------
def sst_network_ablation_forward(video_feature, text_feature, fc_weight,
                                 fc_bias, logit_scale, *, seq_tile=None):
    """video_feature: (B, T, D), text_feature: (B, L, D) (bf16 or f32),
       fc_weight: (sd_dim, D), fc_bias: (sd_dim,), logit_scale: (1,)."""
    v_pool = _max_pool_seq(video_feature, seq_tile)      # (B, D) f32
    t_pool = _max_pool_seq(text_feature, seq_tile)       # (B, D) f32
    x_pool = jnp.concatenate([v_pool, t_pool], axis=0)   # (2B, D)

    w_t = fc_weight.astype(jnp.float32).T                # (D, sd_dim)
    bias = fc_bias.astype(jnp.float32).reshape(1, -1)    # (1, sd_dim)
    # exp + clamp of the single logit-scale scalar done once in the wrapper.
    scale = jnp.minimum(jnp.exp(logit_scale.astype(jnp.float32)),
                        100.0).reshape(1, 1)

    logits_v, loss = _epilogue(x_pool, w_t, bias, scale)
    return {
        'logits_per_video_sd': logits_v,
        'logits_per_text_sd': logits_v.T,   # exact transpose; no 2nd matmul
        'SST_loss': loss[0, 0],
    }


if __name__ == "__main__":
    # Small shapes consistent with the module's forward.  D and sd_dim kept
    # at 128 (lane-dense) and B a multiple of 8 (sublane-dense).
    B, T, L, D, SD_DIM = 16, 48, 32, 128, 128

    key = jax.random.PRNGKey(0)
    k_vf, k_tf, k_w, k_b = jax.random.split(key, 4)

    # Sequence features stay bf16 end-to-end (they dominate HBM bytes);
    # pooled result, projection accumulation and loss math are f32.
    video_feature = jax.random.normal(k_vf, (B, T, D)).astype(jnp.bfloat16)
    text_feature = jax.random.normal(k_tf, (B, L, D)).astype(jnp.bfloat16)

    # nn.Linear(video_feature_dim, sd_dim) style init.
    bound = 1.0 / np.sqrt(D)
    fc_weight = jax.random.uniform(k_w, (SD_DIM, D), minval=-bound,
                                   maxval=bound, dtype=jnp.float32)
    fc_bias = jax.random.uniform(k_b, (SD_DIM,), minval=-bound, maxval=bound,
                                 dtype=jnp.float32)
    logit_scale = jnp.full((1,), np.log(1.0 / 0.07), dtype=jnp.float32)

    fwd = jax.jit(functools.partial(sst_network_ablation_forward,
                                    seq_tile=16))
    out = fwd(video_feature, text_feature, fc_weight, fc_bias, logit_scale)
    jax.block_until_ready(out)

    assert out['logits_per_video_sd'].shape == (B, B)
    assert out['logits_per_text_sd'].shape == (B, B)
    assert out['SST_loss'].shape == ()
    assert bool(jnp.isfinite(out['SST_loss']))
    print("KERNEL_OK")
</pallas_src>

<mosaic_0001>
module attributes {stable_mosaic.version = 11 : i64} {
  func.func @_pool_max_kernel(%arg0: i32, %arg1: i32, %arg2: memref<8x16x128xbf16, #tpu.memory_space<vmem>>, %arg3: memref<8x128xf32, #tpu.memory_space<vmem>>) attributes {dimension_semantics = [#tpu.dimension_semantics<parallel>, #tpu.dimension_semantics<arbitrary>], iteration_bounds = array<i64: 2, 3>, scalar_prefetch = 0 : i64, scratch_operands = 0 : i64, tpu.core_type = #tpu.core_type<tc>, window_params = [{transform_indices = @transform_0, window_bounds = array<i64: 8, 16, 128>}, {transform_indices = @transform_1, window_bounds = array<i64: 8, 128>}]} {
    %c0 = arith.constant 0 : index
    %c0_0 = arith.constant 0 : index
    %c0_1 = arith.constant 0 : index
    %0 = vector.load %arg2[%c0, %c0_0, %c0_1] : memref<8x16x128xbf16, #tpu.memory_space<vmem>>, vector<8x16x128xbf16>
    %1 = arith.extf %0 : vector<8x16x128xbf16> to vector<8x16x128xf32>
    %cst = arith.constant dense<0xFF800000> : vector<8x128xf32>
    %2 = vector.multi_reduction <maximumf>, %1, %cst [1] : vector<8x16x128xf32> to vector<8x128xf32>
    %c0_i32 = arith.constant 0 : i32
    %3 = arith.cmpi eq, %arg1, %c0_i32 : i32
    %4 = arith.extui %3 : i1 to i32
    %c0_i32_2 = arith.constant 0 : i32
    %5 = arith.cmpi ne, %4, %c0_i32_2 : i32
    scf.if %5 {
      %c0_5 = arith.constant 0 : index
      %c0_6 = arith.constant 0 : index
      %9 = vector.load %arg3[%c0_5, %c0_6] : memref<8x128xf32, #tpu.memory_space<vmem>>, vector<8x128xf32>
      tpu.vector_store %arg3[%c0_5, %c0_6], %2 {strides = array<i32>} : memref<8x128xf32, #tpu.memory_space<vmem>>, vector<8x128xf32>,
    } else {
    }
    %c0_i32_3 = arith.constant 0 : i32
    %6 = arith.cmpi sgt, %arg1, %c0_i32_3 : i32
    %7 = arith.extui %6 : i1 to i32
    %c0_i32_4 = arith.constant 0 : i32
    %8 = arith.cmpi ne, %7, %c0_i32_4 : i32
    scf.if %8 {
      %c0_5 = arith.constant 0 : index
      %c0_6 = arith.constant 0 : index
      %9 = vector.load %arg3[%c0_5, %c0_6] : memref<8x128xf32, #tpu.memory_space<vmem>>, vector<8x128xf32>
      %10 = arith.maximumf %9, %2 : vector<8x128xf32>
      %c0_7 = arith.constant 0 : index
      %c0_8 = arith.constant 0 : index
      %11 = vector.load %arg3[%c0_7, %c0_8] : memref<8x128xf32, #tpu.memory_space<vmem>>, vector<8x128xf32>
      tpu.vector_store %arg3[%c0_7, %c0_8], %10 {strides = array<i32>} : memref<8x128xf32, #tpu.memory_space<vmem>>, vector<8x128xf32>,
    } else {
    }
    return
  }
  func.func @transform_0(%arg0: i32, %arg1: i32) -> (i32, i32, i32) {
    %c0_i32 = arith.constant 0 : i32
    %c0_i32_0 = arith.constant 0 : i32
    return %arg0, %arg1, %c0_i32 : i32, i32, i32
  }
  func.func @transform_1(%arg0: i32, %arg1: i32) -> (i32, i32) {
    %c0_i32 = arith.constant 0 : i32
    %c0_i32_0 = arith.constant 0 : i32
    return %arg0, %c0_i32 : i32, i32
  }
}

module attributes {stable_mosaic.version = 11 : i64} {
  func.func @_pool_max_kernel(%arg0: i32, %arg1: i32, %arg2: memref<8x16x128xbf16, #tpu.memory_space<vmem>>, %arg3: memref<8x128xf32, #tpu.memory_space<vmem>>) attributes {dimension_semantics = [#tpu.dimension_semantics<parallel>, #tpu.dimension_semantics<arbitrary>], iteration_bounds = array<i64: 2, 2>, scalar_prefetch = 0 : i64, scratch_operands = 0 : i64, tpu.core_type = #tpu.core_type<tc>, window_params = [{transform_indices = @transform_0, window_bounds = array<i64: 8, 16, 128>}, {transform_indices = @transform_1, window_bounds = array<i64: 8, 128>}]} {
    %c0 = arith.constant 0 : index
    %c0_0 = arith.constant 0 : index
    %c0_1 = arith.constant 0 : index
    %0 = vector.load %arg2[%c0, %c0_0, %c0_1] : memref<8x16x128xbf16, #tpu.memory_space<vmem>>, vector<8x16x128xbf16>
    %1 = arith.extf %0 : vector<8x16x128xbf16> to vector<8x16x128xf32>
    %cst = arith.constant dense<0xFF800000> : vector<8x128xf32>
    %2 = vector.multi_reduction <maximumf>, %1, %cst [1] : vector<8x16x128xf32> to vector<8x128xf32>
    %c0_i32 = arith.constant 0 : i32
    %3 = arith.cmpi eq, %arg1, %c0_i32 : i32
    %4 = arith.extui %3 : i1 to i32
    %c0_i32_2 = arith.constant 0 : i32
    %5 = arith.cmpi ne, %4, %c0_i32_2 : i32
    scf.if %5 {
      %c0_5 = arith.constant 0 : index
      %c0_6 = arith.constant 0 : index
      %9 = vector.load %arg3[%c0_5, %c0_6] : memref<8x128xf32, #tpu.memory_space<vmem>>, vector<8x128xf32>
      tpu.vector_store %arg3[%c0_5, %c0_6], %2 {strides = array<i32>} : memref<8x128xf32, #tpu.memory_space<vmem>>, vector<8x128xf32>,
    } else {
    }
    %c0_i32_3 = arith.constant 0 : i32
    %6 = arith.cmpi sgt, %arg1, %c0_i32_3 : i32
    %7 = arith.extui %6 : i1 to i32
    %c0_i32_4 = arith.constant 0 : i32
    %8 = arith.cmpi ne, %7, %c0_i32_4 : i32
    scf.if %8 {
      %c0_5 = arith.constant 0 : index
      %c0_6 = arith.constant 0 : index
      %9 = vector.load %arg3[%c0_5, %c0_6] : memref<8x128xf32, #tpu.memory_space<vmem>>, vector<8x128xf32>
      %10 = arith.maximumf %9, %2 : vector<8x128xf32>
      %c0_7 = arith.constant 0 : index
      %c0_8 = arith.constant 0 : index
      %11 = vector.load %arg3[%c0_7, %c0_8] : memref<8x128xf32, #tpu.memory_space<vmem>>, vector<8x128xf32>
      tpu.vector_store %arg3[%c0_7, %c0_8], %10 {strides = array<i32>} : memref<8x128xf32, #tpu.memory_space<vmem>>, vector<8x128xf32>,
    } else {
    }
    return
  }
  func.func @transform_0(%arg0: i32, %arg1: i32) -> (i32, i32, i32) {
    %c0_i32 = arith.constant 0 : i32
    %c0_i32_0 = arith.constant 0 : i32
    return %arg0, %arg1, %c0_i32 : i32, i32, i32
  }
  func.func @transform_1(%arg0: i32, %arg1: i32) -> (i32, i32) {
    %c0_i32 = arith.constant 0 : i32
    %c0_i32_0 = arith.constant 0 : i32
    return %arg0, %c0_i32 : i32, i32
  }
}

module attributes {stable_mosaic.version = 11 : i64} {
  func.func @_epilogue_kernel(%arg0: memref<32x128xf32, #tpu.memory_space<vmem>>, %arg1: memref<128x128xf32, #tpu.memory_space<vmem>>, %arg2: memref<1x128xf32, #tpu.memory_space<vmem>>, %arg3: memref<1x1xf32, #tpu.memory_space<smem>>, %arg4: memref<16x16xf32, #tpu.memory_space<vmem>>, %arg5: memref<1x1xf32, #tpu.memory_space<vmem>>) attributes {dimension_semantics = [], scalar_prefetch = 0 : i64, scratch_operands = 0 : i64, tpu.core_type = #tpu.core_type<tc>} {
    %c0 = arith.constant 0 : index
    %c0_0 = arith.constant 0 : index
    %0 = vector.load %arg0[%c0, %c0_0] : memref<32x128xf32, #tpu.memory_space<vmem>>, vector<32x128xf32>
    %c0_1 = arith.constant 0 : index
    %c0_2 = arith.constant 0 : index
    %1 = vector.load %arg1[%c0_1, %c0_2] : memref<128x128xf32, #tpu.memory_space<vmem>>, vector<128x128xf32>
    %c0_3 = arith.constant 0 : index
    %c0_4 = arith.constant 0 : index
    %2 = vector.load %arg2[%c0_3, %c0_4] : memref<1x128xf32, #tpu.memory_space<vmem>>, vector<1x128xf32>
    %cst = arith.constant dense<0.000000e+00> : vector<32x128xf32>
    %3 = tpu.matmul %0, %1, %cst {dimension_numbers = #tpu.dot_dimension_numbers<[1], [0], [0], [1], [0, 0, 1, 1], [], []>} : vector<32x128xf32>, vector<128x128xf32>, vector<32x128xf32> -> vector<32x128xf32>
    %4 = vector.broadcast %2 : vector<1x128xf32> to vector<32x128xf32>
    %5 = arith.addf %3, %4 : vector<32x128xf32>
    %6 = vector.extract_strided_slice %5 {offsets = [0, 0], sizes = [16, 128], strides = [1, 1]} : vector<32x128xf32> to vector<16x128xf32>
    %7 = vector.extract_strided_slice %5 {offsets = [16, 0], sizes = [16, 128], strides = [1, 1]} : vector<32x128xf32> to vector<16x128xf32>
    %c0_5 = arith.constant 0 : index
    %c0_6 = arith.constant 0 : index
    %8 = memref.load %arg3[%c0_5, %c0_6] : memref<1x1xf32, #tpu.memory_space<smem>>
    %cst_7 = arith.constant dense<0.000000e+00> : vector<16x16xf32>
    %9 = tpu.matmul %6, %7, %cst_7 {dimension_numbers = #tpu.dot_dimension_numbers<[1], [1], [0], [0], [0, 0, 1, 0], [], []>} : vector<16x128xf32>, vector<16x128xf32>, vector<16x16xf32> -> vector<16x16xf32>
    %10 = vector.broadcast %8 : f32 to vector<16x16xf32>
    %11 = arith.mulf %9, %10 : vector<16x16xf32>
    %c0_8 = arith.constant 0 : index
    %c0_9 = arith.constant 0 : index
    %12 = vector.load %arg4[%c0_8, %c0_9] : memref<16x16xf32, #tpu.memory_space<vmem>>, vector<16x16xf32>
    tpu.vector_store %arg4[%c0_8, %c0_9], %11 {strides = array<i32>} : memref<16x16xf32, #tpu.memory_space<vmem>>, vector<16x16xf32>,
    %13 = tpu.iota {dimensions = array<i32: 0>} : vector<16x16xi32>
    %14 = tpu.iota {dimensions = array<i32: 1>} : vector<16x16xi32>
    %15 = arith.cmpi eq, %13, %14 : vector<16x16xi32>
    %16 = arith.extui %15 : vector<16x16xi1> to vector<16x16xi32>
    %17 = arith.sitofp %16 : vector<16x16xi32> to vector<16x16xf32>
    %18 = arith.mulf %11, %17 : vector<16x16xf32>
    %19 = vector.shape_cast %18 : vector<16x16xf32> to vector<1x16x16xf32>
    %cst_10 = arith.constant dense<0.000000e+00> : vector<1xf32>
    %20 = vector.multi_reduction <add>, %19, %cst_10 [1, 2] : vector<1x16x16xf32> to vector<1xf32>
    %21 = vector.shape_cast %20 : vector<1xf32> to vector<1x1x1xf32>
    %22 = vector.extract %21[0, 0, 0] : f32 from vector<1x1x1xf32>
    %cst_11 = arith.constant 1.600000e+01 : f32
    %23 = arith.divf %22, %cst_11 : f32
    %cst_12 = arith.constant dense<0xFF800000> : vector<16xf32>
    %24 = vector.multi_reduction <maximumf>, %11, %cst_12 [1] : vector<16x16xf32> to vector<16xf32>
    %25 = vector.shape_cast %24 : vector<16xf32> to vector<16x1xf32>
    %26 = vector.broadcast %25 : vector<16x1xf32> to vector<16x16xf32>
    %27 = arith.subf %11, %26 : vector<16x16xf32>
    %28 = math.exp %27 : vector<16x16xf32>
    %cst_13 = arith.constant dense<0.000000e+00> : vector<16xf32>
    %29 = vector.multi_reduction <add>, %28, %cst_13 [1] : vector<16x16xf32> to vector<16xf32>
    %30 = vector.shape_cast %29 : vector<16xf32> to vector<16x1xf32>
    %31 = math.log %30 : vector<16x1xf32>
    %32 = arith.addf %31, %25 : vector<16x1xf32>
    %cst_14 = arith.constant dense<0xFF800000> : vector<16xf32>
    %33 = vector.multi_reduction <maximumf>, %11, %cst_14 [0] : vector<16x16xf32> to vector<16xf32>
    %34 = vector.shape_cast %33 : vector<16xf32> to vector<1x16xf32>
    %35 = vector.broadcast %34 : vector<1x16xf32> to vector<16x16xf32>
    %36 = arith.subf %11, %35 : vector<16x16xf32>
    %37 = math.exp %36 : vector<16x16xf32>
    %cst_15 = arith.constant dense<0.000000e+00> : vector<16xf32>
    %38 = vector.multi_reduction <add>, %37, %cst_15 [0] : vector<16x16xf32> to vector<16xf32>
    %39 = vector.shape_cast %38 : vector<16xf32> to vector<1x16xf32>
    %40 = math.log %39 : vector<1x16xf32>
    %41 = arith.addf %40, %34 : vector<1x16xf32>
    %42 = vector.shape_cast %32 : vector<16x1xf32> to vector<1x16x1xf32>
    %cst_16 = arith.constant dense<0.000000e+00> : vector<1xf32>
    %43 = vector.multi_reduction <add>, %42, %cst_16 [1, 2] : vector<1x16x1xf32> to vector<1xf32>
    %44 = vector.shape_cast %43 : vector<1xf32> to vector<1x1x1xf32>
    %45 = vector.extract %44[0, 0, 0] : f32 from vector<1x1x1xf32>
    %cst_17 = arith.constant 1.600000e+01 : f32
    %46 = arith.divf %45, %cst_17 : f32
    %47 = arith.subf %46, %23 : f32
    %48 = vector.shape_cast %41 : vector<1x16xf32> to vector<1x1x16xf32>
    %cst_18 = arith.constant dense<0.000000e+00> : vector<1xf32>
    %49 = vector.multi_reduction <add>, %48, %cst_18 [1, 2] : vector<1x1x16xf32> to vector<1xf32>
    %50 = vector.shape_cast %49 : vector<1xf32> to vector<1x1x1xf32>
    %51 = vector.extract %50[0, 0, 0] : f32 from vector<1x1x1xf32>
    %cst_19 = arith.constant 1.600000e+01 : f32
    %52 = arith.divf %51, %cst_19 : f32
    %53 = arith.subf %52, %23 : f32
    %54 = arith.addf %47, %53 : f32
    %cst_20 = arith.constant 5.000000e-01 : f32
    %55 = arith.mulf %cst_20, %54 : f32
    %56 = vector.broadcast %55 : f32 to vector<1x1xf32>
    %c0_21 = arith.constant 0 : index
    %c0_22 = arith.constant 0 : index
    %57 = vector.load %arg5[%c0_21, %c0_22] : memref<1x1xf32, #tpu.memory_space<vmem>>, vector<1x1xf32>
    tpu.vector_store %arg5[%c0_21, %c0_22], %56 {strides = array<i32>} : memref<1x1xf32, #tpu.memory_space<vmem>>, vector<1x1xf32>,
    return
  }
}

</mosaic_0001>

<bundles_post_ra>
// kernel: sst_network_ablation_forward.4
= control target key start
LH: loop header
LB: loop body
LE: loop exit
PB: predicated region body
PF: predicated region fallthrough
CT: control target
= control target key end

     0   :  { %6 = vsyncpa [#allocation3], 0  ;;  %s759_s0 = inlined_call_operand.hbm [shape: bf16[16,32,128], index: 0, kind: input, shape index: {}]   ;;  %s760_s1 = inlined_call_operand.vmem [shape: f32[16,128], index: 1, kind: output, shape index: {}]  }
   0x1   :  { %8 = vsyncpa [#allocation3 + $0x1], 0  ;;  %s627_s6 = smov 0   ;;  %s629_s7 = smov 0  }
   0x2   :  { %s631_s8 = smov 0   ;;  %s633_s9 = smov 0  }
   0x3   :  { %s635_s10 = smov 0   ;;  %s637_s11 = smov 0  }
   0x4   :  { %s639_s12 = smov 0   ;;  %s641_s13 = smov 0  }
   0x5 LB: > { %s23_s14 = sadd.s32 1, %s601_s11  ;;  %s26_s15 = sadd.s32 1, %s605_s12  ;;  %s609_s13 = sphi %s641_s13, %s14_s13   ;;  %s605_s12 = sphi %s639_s12, %s769_s12   ;;  %s601_s11 = sphi %s637_s11, %s768_s11   ;;  %s597_s10 = sphi %s635_s10, %s767_s10   ;;  %s593_s9 = sphi %s633_s9, %s766_s9   ;;  %s589_s8 = sphi %s631_s8, %s765_s8   ;;  %s585_s7 = sphi %s629_s7, %s764_s7   ;;  %s581_s6 = sphi %s627_s6, %s763_s6  }
   0x6   : > { %p24_p0 = scmp.ge.s32.totalorder %s23_s14, 2  ;;  %s406_s16 = sadd.s32 4294967295, %s609_s13  }
   0x7   : > { %p42_p1 = scmp.ne.s32.totalorder %s589_s8, %s585_s7  ;;  %p43_p2 = scmp.eq.s32.totalorder %s609_s13, 0 }
   0x8   : > { %s771_s14 = smov (%p24_p0, %s23_s14), 0  ;;  %s773_s15 = smov (!%p24_p0, %s26_s15), %s605_s12 }
   0x9   : > { %s31_s17 = ssub.s32 %s601_s11, %s771_s14  ;;  %p28_p3 = scmp.ge.s32.totalorder %s773_s15, 2 }
   0xa   : > { %p48_p4 = scmp.ne.s32.totalorder %s585_s7, %s581_s6  ;;  %p677_p5 = por %p43_p2, %p42_p1 }
   0xb   : > { %p49_p6 = scmp.eq.s32.totalorder %s406_s16, 0  ;;  %s775_s15 = smov (%p28_p3, %s773_s15), 0 }
   0xc   : > { %s30_s20 = ssub.s32 %s605_s12, %s775_s15  ;;  %s35_s22 = sadd.s32 1, %s589_s8 }
   0xd   : > { %p683_p7 = por %p49_p6, %p48_p4  ;;  %s32_s21 = sor.u32 %s31_s17, %s30_s20 }
   0xe   : > { %p33_p8 = scmp.eq.s32.totalorder %s32_s21, 0  ;;  %p409_p9 = scmp.ge.s32.totalorder %s609_s13, 4 }
  0x10   : > { %s691_s23 = scalar_select %p33_p8, %s589_s8, %s35_s22  }
  0x11   : > { %94 = sbr.rel (%p409_p9) target bundleno = 38 (0x26), region = 16 }
  0x16   : > { %s98_s24 = sand.u32 1, %s589_s8   ;;  %s412_s25 = sshll.u32 %s601_s11, 1 }
  0x17   : > { %s410_s26 = sshll.u32 %s98_s24, 6  ;;  %s424_s27 = sshll.u32 %s605_s12, 5 }
  0x18   : > { %s108_s28 = sadd.s32 %s424_s27, %s412_s25  ;;  %s102_s30 = scalar_lea.vmem [#allocation2], %s410_s26 }
  0x19   : > { %s414_s29 = sshll.u32 %s108_s28, 2  ;;  %s125_s2 = sshll.u32 %s102_s30, 4  ;;  %s126_s2 = int_to_ptr.vmem [resolvable:$true] %s125_s2 }
  0x1a   : > { %s110_s5 = scalar_lea.hbm %s759_s0, %s414_s29  ;;  %s611_s16 = smov 256  }
  0x1b   : > { %s464_s6 = scalar_select %p677_p5, [#allocation0], [#allocation6] }
  0x1c   : > { %465 = sst [smem:[#allocation5]] (%p677_p5), %s611_s16  ;;  %s123_s20 = sshll.u32 %s110_s5, 4  ;;  %s124_s20 = int_to_ptr.hbm [resolvable:$true] %s123_s20 }
  0x1d   : > { %s115_s17 = sld [smem:[%s464_s6]]   ;;  %s612_s21 = smov 128  }
  0x1e   : > { %466 = sst [smem:[#allocation5 + $0x1]] (%p677_p5), %s612_s21  ;;  %s613_s22 = smov 2  }
  0x1f   : > { %467 = sst [smem:[#allocation5 + $0x2]] (%p677_p5), %s613_s22  ;;  %s614_s25 = smov 64  }
  0x20   : > { %468 = sst [smem:[#allocation5 + $0x3]] (%p677_p5), %s614_s25  ;;  %s615_s27 = smov 4  }
  0x21   : > { %469 = sst [smem:[#allocation5 + $0x4]] (%p677_p5), %s614_s25  ;;  %s99_s29 = scalar_lea.sflag [#allocation3], %s98_s24 }
  0x22   : > { %470 = sst [smem:[#allocation5 + $0x5]] (%p677_p5), %s615_s27  ;;  %s616_s30 = smov [#allocation4]  }
  0x23   : > { %s415_s26 = sshll.u32 %s115_s17, 26 }
  0x24   : > { %s416_s28 = sadd.s32 134217728, %s415_s26 }
  0x25   : > { %471 = dma.general (%p677_p5), %s124_s20, 1024, %s126_s2, %s99_s29, %s616_s30, [#allocation5], %s416_s28, 0  }
  0x26 PF: > { %p417_p10 = scmp.ge.s32.totalorder %s609_s13, 1  ;;  %p146_p11 = scmp.lt.s32.totalorder %s609_s13, 5 }
  0x28   : > { %p147_p12 = pnand %p417_p10, %p146_p11 }
  0x29   : > { %s152_s3 = sand.u32 (!%p147_p12), 1, %s585_s7  }
  0x2a   : > { %150 = sbr.rel (%p147_p12) target bundleno = 94 (0x5e), region = 24  ;;  %s418_s4 = sshll.u32 (!%p147_p12), %s152_s3, 6 }
  0x2b   : > { %s153_s5 = scalar_lea.sflag (!%p147_p12), [#allocation3], %s152_s3  ;;  %s156_s6 = scalar_lea.vmem (!%p147_p12), [#allocation2], %s418_s4 }
  0x2f   : > { %576 = dma.done.wait (%p683_p7), %s153_s5, 1024  }
  0x30   : > { %578 = vsyncadd (%p683_p7), %s153_s5, 4294966272  ;;  %p177_p13 = scmp.lt.s32.totalorder %s597_s10, 1  ;;  %v426_v0 = vld [vmem:[%s156_s6] sm:$0xff]   ;;  %v457_v1 = vld [vmem:[%s156_s6 + $0x8] sm:$0xff]   ;;  %p420_p0 = scmp.ne.s32.totalorder %s593_s9, 0 }
  0x31   : > { %v458_v2 = vld [vmem:[%s156_s6 + $0x10] sm:$0xff]   ;;  %v427_v3 = vunpack.c.l.bf16 %v426_v0  ;;  %v428_v4 = vunpack.c.h.bf16 %v426_v0  ;;  %v431_v5 = vunpack.c.l.bf16 %v457_v1  ;;  %v432_v6 = vunpack.c.h.bf16 %v457_v1  ;;  %v459_v7 = vld [vmem:[%s156_s6 + $0x18] sm:$0xff]   ;;  %v460_v8 = vld [vmem:[%s156_s6 + $0x20] sm:$0xff]  }
  0x32   : > { %s777_s10 = smov (!%p177_p13, %s597_s10), 1  ;;  %v461_v9 = vld [vmem:[%s156_s6 + $0x28] sm:$0xff]   ;;  %v435_v10 = vunpack.c.l.bf16 %v458_v2  ;;  %v436_v11 = vunpack.c.h.bf16 %v458_v2  ;;  %v439_v12 = vunpack.c.l.bf16 %v459_v7  ;;  %v440_v13 = vunpack.c.h.bf16 %v459_v7  ;;  %v462_v14 = vld [vmem:[%s156_s6 + $0x30] sm:$0xff]   ;;  %v463_v15 = vld [vmem:[%s156_s6 + $0x38] sm:$0xff]  }
  0x33   : > { %s419_s18 = sshll.u32 %s777_s10, 3  ;;  %v443_v16 = vunpack.c.l.bf16 %v460_v8  ;;  %v444_v17 = vunpack.c.h.bf16 %v460_v8  ;;  %v447_v18 = vunpack.c.l.bf16 %v461_v9  ;;  %v448_v19 = vunpack.c.h.bf16 %v461_v9 }
  0x34   : > { %s728_s16 = scalar_lea.vmem %s760_s1, %s419_s18  ;;  %v451_v20 = vunpack.c.l.bf16 %v462_v14  ;;  %v452_v21 = vunpack.c.h.bf16 %v462_v14  ;;  %v455_v22 = vunpack.c.l.bf16 %v463_v15  ;;  %v456_v23 = vunpack.c.h.bf16 %v463_v15 }
  0x35   : > { %v213_v24 = vmax.f32 %v427_v3, %v428_v4  ;;  %v220_v25 = vmax.f32 %v431_v5, %v432_v6  ;;  %v227_v26 = vmax.f32 %v435_v10, %v436_v11  ;;  %v234_v27 = vmax.f32 %v439_v12, %v440_v13 }
  0x36   : > { %v241_v28 = vmax.f32 %v443_v16, %v444_v17  ;;  %v248_v29 = vmax.f32 %v447_v18, %v448_v19  ;;  %v255_v30 = vmax.f32 %v451_v20, %v452_v21  ;;  %v262_v31 = vmax.f32 %v455_v22, %v456_v23 }
  0x37   : > { %v214_v32 = vrot.slane %v213_v24, 4  ;;  %v221_v33 = vrot.slane %v220_v25, 4  ;;  %v228_v34 = vrot.slane %v227_v26, 4  ;;  %v235_v35 = vrot.slane %v234_v27, 4 }
  0x38   : > { %v242_v36 = vrot.slane %v241_v28, 4  ;;  %v249_v37 = vrot.slane %v248_v29, 4  ;;  %v256_v38 = vrot.slane %v255_v30, 4  ;;  %v263_v39 = vrot.slane %v262_v31, 4 }
  0x39   : > { %v215_v40 = vmax.f32 %v213_v24, %v214_v32  ;;  %v222_v41 = vmax.f32 %v220_v25, %v221_v33  ;;  %v229_v42 = vmax.f32 %v227_v26, %v228_v34  ;;  %v236_v43 = vmax.f32 %v234_v27, %v235_v35 }
  0x3a   : > { %v243_v44 = vmax.f32 %v241_v28, %v242_v36  ;;  %v250_v45 = vmax.f32 %v248_v29, %v249_v37  ;;  %v257_v46 = vmax.f32 %v255_v30, %v256_v38  ;;  %v264_v47 = vmax.f32 %v262_v31, %v263_v39 }
  0x3b   : > { %v216_v48 = vrot.slane %v215_v40, 2  ;;  %v223_v49 = vrot.slane %v222_v41, 2  ;;  %v230_v50 = vrot.slane %v229_v42, 2  ;;  %v237_v51 = vrot.slane %v236_v43, 2 }
  0x3c   : > { %v244_v52 = vrot.slane %v243_v44, 2  ;;  %v251_v53 = vrot.slane %v250_v45, 2  ;;  %v258_v54 = vrot.slane %v257_v46, 2  ;;  %v265_v55 = vrot.slane %v264_v47, 2 }
  0x3d   : > { %v217_v56 = vmax.f32 %v215_v40, %v216_v48  ;;  %v224_v57 = vmax.f32 %v222_v41, %v223_v49  ;;  %v231_v58 = vmax.f32 %v229_v42, %v230_v50  ;;  %v238_v59 = vmax.f32 %v236_v43, %v237_v51 }
  0x3e   : > { %v245_v60 = vmax.f32 %v243_v44, %v244_v52  ;;  %v252_v61 = vmax.f32 %v250_v45, %v251_v53  ;;  %v259_v62 = vmax.f32 %v257_v46, %v258_v54  ;;  %v266_v63 = vmax.f32 %v264_v47, %v265_v55  ;;  %272 = sbr.rel (%p420_p0) target bundleno = 76 (0x4c), region = 32 }
  0x3f   : > { %v218_v0 = vrot.slane %v217_v56, 1  ;;  %v225_v1 = vrot.slane %v224_v57, 1  ;;  %v232_v2 = vrot.slane %v231_v58, 1  ;;  %v239_v3 = vrot.slane %v238_v59, 1 }
  0x40   : > { %v246_v4 = vrot.slane %v245_v60, 1  ;;  %v253_v5 = vrot.slane %v252_v61, 1  ;;  %v260_v6 = vrot.slane %v259_v62, 1  ;;  %v267_v7 = vrot.slane %v266_v63, 1 }
  0x41   : > { %v219_v8 = vmax.f32 %v217_v56, %v218_v0  ;;  %v226_v9 = vmax.f32 %v224_v57, %v225_v1  ;;  %v233_v10 = vmax.f32 %v231_v58, %v232_v2  ;;  %v240_v11 = vmax.f32 %v238_v59, %v239_v3 }
  0x42   : > { %v247_v12 = vmax.f32 %v245_v60, %v246_v4  ;;  %v254_v13 = vmax.f32 %v252_v61, %v253_v5  ;;  %v261_v14 = vmax.f32 %v259_v62, %v260_v6  ;;  %v268_v15 = vmax.f32 %v266_v63, %v267_v7 }
  0x43   : > { %vm281_vm0 = vcmask 1041409   ;;  %vm283_vm1 = vcmask 1042434   ;;  %vm285_vm2 = vcmask 1043459   ;;  %vm287_vm3 = vcmask 1044484  }
  0x44   : > { %v282_v16 = vsel %vm281_vm0, %v226_v9, %v219_v8  ;;  %vm289_vm4 = vcmask 1045509   ;;  %vm291_vm5 = vcmask 1046534   ;;  %vm293_vm6 = vcmask 1047559  }
  0x45   : > { %v284_v17 = vsel %vm283_vm1, %v233_v10, %v282_v16 }
  0x46   : > { %v286_v18 = vsel %vm285_vm2, %v240_v11, %v284_v17 }
  0x47   : > { %v288_v19 = vsel %vm287_vm3, %v247_v12, %v286_v18 }
  0x48   : > { %v290_v20 = vsel %vm289_vm4, %v254_v13, %v288_v19 }
  0x49   : > { %v292_v21 = vsel %vm291_vm5, %v261_v14, %v290_v20 }
  0x4a   : > { %v294_v22 = vsel %vm293_vm6, %v268_v15, %v292_v21 }
  0x4b   : > { %296 = vst [vmem:[%s728_s16] sm:$0xff] %v294_v22 }
  0x4c PF: > { %p421_p1 = scmp.le.s32.totalorder %s593_s9, 0 }
  0x4e   : > { %300 = sbr.rel (%p421_p1) target bundleno = 94 (0x5e), region = 36 }
  0x53   : > { %vm310_vm7 = vcmask 1041409   ;;  %vm312_vm8 = vcmask 1042434   ;;  %vm314_vm9 = vcmask 1043459   ;;  %vm316_vm10 = vcmask 1044484   ;;  %v301_v27 = vld [vmem:[%s728_s16] sm:$0xff] }
  0x54   : > { %v311_v23 = vsel %vm310_vm7, %v226_v9, %v219_v8  ;;  %vm318_vm11 = vcmask 1045509   ;;  %vm320_vm12 = vcmask 1046534   ;;  %vm322_vm13 = vcmask 1047559  }
  0x55   : > { %v313_v24 = vsel %vm312_vm8, %v233_v10, %v311_v23 }
  0x56   : > { %v315_v25 = vsel %vm314_vm9, %v240_v11, %v313_v24 }
  0x57   : > { %v317_v26 = vsel %vm316_vm10, %v247_v12, %v315_v25 }
  0x58   : > { %v319_v28 = vsel %vm318_vm11, %v254_v13, %v317_v26 }
  0x59   : > { %v321_v29 = vsel %vm320_vm12, %v261_v14, %v319_v28 }
  0x5a   : > { %v323_v30 = vsel %vm322_vm13, %v268_v15, %v321_v29 }
  0x5b   : > { %v325_v31 = vmax.f32 %v301_v27, %v323_v30 }
  0x5d   : > { %326 = vst [vmem:[%s728_s16] sm:$0xff] %v325_v31 }
  0x5e PF: > { %s14_s13 = sadd.s32 1, %s609_s13   ;;  %s763_s6 = smov %s585_s7 }
  0x5f   : > { %p11_p2 = scmp.ge.s32.totalorder %s14_s13, 6   ;;  %s764_s7 = smov %s589_s8 }
  0x60   : > { %s765_s8 = smov %s691_s23  ;;  %s766_s9 = smov %s601_s11 }
  0x61   : > { %s767_s10 = smov %s605_s12  ;;  %s768_s11 = smov %s771_s14 }
  0x62   : > { %s769_s12 = smov %s775_s15  ;;  %13 = sbr.rel (!%p11_p2) target bundleno = 5 (0x5), region = 77 }
  0x67   :  { %346 = vsyncpa [#allocation3], 1 }
  0x68   :  { %348 = vsyncpa [#allocation3 + $0x1], 1 }

// kernel: sst_network_ablation_forward.3
= control target key start
LH: loop header
LB: loop body
LE: loop exit
PB: predicated region body
PF: predicated region fallthrough
CT: control target
= control target key end

     0   :  { %6 = vsyncpa [#allocation3], 0  ;;  %s759_s0 = inlined_call_operand.hbm [shape: bf16[16,48,128], index: 0, kind: input, shape index: {}]   ;;  %s760_s1 = inlined_call_operand.vmem [shape: f32[16,128], index: 1, kind: output, shape index: {}]  }
   0x1   :  { %8 = vsyncpa [#allocation3 + $0x1], 0  ;;  %s627_s6 = smov 0   ;;  %s629_s7 = smov 0  }
   0x2   :  { %s631_s8 = smov 0   ;;  %s633_s9 = smov 0  }
   0x3   :  { %s635_s10 = smov 0   ;;  %s637_s11 = smov 0  }
   0x4   :  { %s639_s12 = smov 0   ;;  %s641_s13 = smov 0  }
   0x5 LB: > { %s23_s14 = sadd.s32 1, %s601_s11  ;;  %s26_s15 = sadd.s32 1, %s605_s12  ;;  %s609_s13 = sphi %s641_s13, %s14_s13   ;;  %s605_s12 = sphi %s639_s12, %s769_s12   ;;  %s601_s11 = sphi %s637_s11, %s768_s11   ;;  %s597_s10 = sphi %s635_s10, %s767_s10   ;;  %s593_s9 = sphi %s633_s9, %s766_s9   ;;  %s589_s8 = sphi %s631_s8, %s765_s8   ;;  %s585_s7 = sphi %s629_s7, %s764_s7   ;;  %s581_s6 = sphi %s627_s6, %s763_s6  }
   0x6   : > { %p24_p0 = scmp.ge.s32.totalorder %s23_s14, 3  ;;  %s406_s16 = sadd.s32 4294967295, %s609_s13  }
   0x7   : > { %p42_p1 = scmp.ne.s32.totalorder %s589_s8, %s585_s7  ;;  %p43_p2 = scmp.eq.s32.totalorder %s609_s13, 0 }
   0x8   : > { %s771_s14 = smov (%p24_p0, %s23_s14), 0  ;;  %s773_s15 = smov (!%p24_p0, %s26_s15), %s605_s12 }
   0x9   : > { %s31_s17 = ssub.s32 %s601_s11, %s771_s14  ;;  %p28_p3 = scmp.ge.s32.totalorder %s773_s15, 2 }
   0xa   : > { %p48_p4 = scmp.ne.s32.totalorder %s585_s7, %s581_s6  ;;  %p677_p5 = por %p43_p2, %p42_p1 }
   0xb   : > { %p49_p6 = scmp.eq.s32.totalorder %s406_s16, 0  ;;  %s775_s15 = smov (%p28_p3, %s773_s15), 0 }
   0xc   : > { %s30_s20 = ssub.s32 %s605_s12, %s775_s15  ;;  %s35_s22 = sadd.s32 1, %s589_s8 }
   0xd   : > { %p683_p7 = por %p49_p6, %p48_p4  ;;  %s32_s21 = sor.u32 %s31_s17, %s30_s20 }
   0xe   : > { %p33_p8 = scmp.eq.s32.totalorder %s32_s21, 0  ;;  %p409_p9 = scmp.ge.s32.totalorder %s609_s13, 6 }
  0x10   : > { %s691_s23 = scalar_select %p33_p8, %s589_s8, %s35_s22  }
  0x11   : > { %94 = sbr.rel (%p409_p9) target bundleno = 37 (0x25), region = 16 }
  0x16   : > { %s98_s24 = sand.u32 1, %s589_s8   ;;  %s412_s25 = sshll.u32 %s601_s11, 1 }
  0x17   : > { %s410_s26 = sshll.u32 %s98_s24, 6  ;;  %s463_s27 = smul.u32 48, %s605_s12 }
  0x18   : > { %s464_s28 = scalar_select %p677_p5, [#allocation0], [#allocation6] }
  0x19   : > { %s108_s29 = sadd.s32 %s463_s27, %s412_s25  ;;  %s102_s30 = scalar_lea.vmem [#allocation2], %s410_s26 }
  0x1a   : > { %s125_s2 = sshll.u32 %s102_s30, 4  ;;  %s414_s3 = sshll.u32 %s108_s29, 2  ;;  %s126_s2 = int_to_ptr.vmem [resolvable:$true] %s125_s2 }
  0x1b   : > { %s115_s4 = sld [smem:[%s464_s28]]   ;;  %s110_s16 = scalar_lea.hbm %s759_s0, %s414_s3 }
  0x1c   : > { %s123_s17 = sshll.u32 %s110_s16, 4  ;;  %s611_s20 = smov 384   ;;  %s124_s17 = int_to_ptr.hbm [resolvable:$true] %s123_s17 }
  0x1d   : > { %465 = sst [smem:[#allocation5]] (%p677_p5), %s611_s20  ;;  %s612_s21 = smov 128  }
  0x1e   : > { %466 = sst [smem:[#allocation5 + $0x1]] (%p677_p5), %s612_s21  ;;  %s613_s25 = smov 2  }
  0x1f   : > { %467 = sst [smem:[#allocation5 + $0x2]] (%p677_p5), %s613_s25  ;;  %s614_s27 = smov 64  }
  0x20   : > { %468 = sst [smem:[#allocation5 + $0x3]] (%p677_p5), %s614_s27  ;;  %s615_s28 = smov 4  }
  0x21   : > { %s415_s22 = sshll.u32 %s115_s4, 26  ;;  %469 = sst [smem:[#allocation5 + $0x4]] (%p677_p5), %s614_s27 }
  0x22   : > { %s416_s26 = sadd.s32 134217728, %s415_s22  ;;  %470 = sst [smem:[#allocation5 + $0x5]] (%p677_p5), %s615_s28 }
  0x23   : > { %s99_s29 = scalar_lea.sflag [#allocation3], %s98_s24  ;;  %s616_s30 = smov [#allocation4]  }
  0x24   : > { %471 = dma.general (%p677_p5), %s124_s17, 1024, %s126_s2, %s99_s29, %s616_s30, [#allocation5], %s416_s26, 0  }
  0x25 PF: > { %p417_p10 = scmp.ge.s32.totalorder %s609_s13, 1  ;;  %p146_p11 = scmp.lt.s32.totalorder %s609_s13, 7 }
  0x27   : > { %p147_p12 = pnand %p417_p10, %p146_p11 }
  0x28   : > { %s152_s3 = sand.u32 (!%p147_p12), 1, %s585_s7  }
  0x29   : > { %150 = sbr.rel (%p147_p12) target bundleno = 93 (0x5d), region = 24  ;;  %s418_s4 = sshll.u32 (!%p147_p12), %s152_s3, 6 }
  0x2a   : > { %s153_s5 = scalar_lea.sflag (!%p147_p12), [#allocation3], %s152_s3  ;;  %s156_s6 = scalar_lea.vmem (!%p147_p12), [#allocation2], %s418_s4 }
  0x2e   : > { %576 = dma.done.wait (%p683_p7), %s153_s5, 1024  }
  0x2f   : > { %578 = vsyncadd (%p683_p7), %s153_s5, 4294966272  ;;  %p177_p13 = scmp.lt.s32.totalorder %s597_s10, 1  ;;  %v425_v0 = vld [vmem:[%s156_s6] sm:$0xff]   ;;  %v456_v1 = vld [vmem:[%s156_s6 + $0x8] sm:$0xff]   ;;  %p420_p0 = scmp.ne.s32.totalorder %s593_s9, 0 }
  0x30   : > { %v457_v2 = vld [vmem:[%s156_s6 + $0x10] sm:$0xff]   ;;  %v426_v3 = vunpack.c.l.bf16 %v425_v0  ;;  %v427_v4 = vunpack.c.h.bf16 %v425_v0  ;;  %v430_v5 = vunpack.c.l.bf16 %v456_v1  ;;  %v431_v6 = vunpack.c.h.bf16 %v456_v1  ;;  %v458_v7 = vld [vmem:[%s156_s6 + $0x18] sm:$0xff]   ;;  %v459_v8 = vld [vmem:[%s156_s6 + $0x20] sm:$0xff]  }
  0x31   : > { %s777_s10 = smov (!%p177_p13, %s597_s10), 1  ;;  %v460_v9 = vld [vmem:[%s156_s6 + $0x28] sm:$0xff]   ;;  %v434_v10 = vunpack.c.l.bf16 %v457_v2  ;;  %v435_v11 = vunpack.c.h.bf16 %v457_v2  ;;  %v438_v12 = vunpack.c.l.bf16 %v458_v7  ;;  %v439_v13 = vunpack.c.h.bf16 %v458_v7  ;;  %v461_v14 = vld [vmem:[%s156_s6 + $0x30] sm:$0xff]   ;;  %v462_v15 = vld [vmem:[%s156_s6 + $0x38] sm:$0xff]  }
  0x32   : > { %s419_s18 = sshll.u32 %s777_s10, 3  ;;  %v442_v16 = vunpack.c.l.bf16 %v459_v8  ;;  %v443_v17 = vunpack.c.h.bf16 %v459_v8  ;;  %v446_v18 = vunpack.c.l.bf16 %v460_v9  ;;  %v447_v19 = vunpack.c.h.bf16 %v460_v9 }
  0x33   : > { %s728_s16 = scalar_lea.vmem %s760_s1, %s419_s18  ;;  %v450_v20 = vunpack.c.l.bf16 %v461_v14  ;;  %v451_v21 = vunpack.c.h.bf16 %v461_v14  ;;  %v454_v22 = vunpack.c.l.bf16 %v462_v15  ;;  %v455_v23 = vunpack.c.h.bf16 %v462_v15 }
  0x34   : > { %v213_v24 = vmax.f32 %v426_v3, %v427_v4  ;;  %v220_v25 = vmax.f32 %v430_v5, %v431_v6  ;;  %v227_v26 = vmax.f32 %v434_v10, %v435_v11  ;;  %v234_v27 = vmax.f32 %v438_v12, %v439_v13 }
  0x35   : > { %v241_v28 = vmax.f32 %v442_v16, %v443_v17  ;;  %v248_v29 = vmax.f32 %v446_v18, %v447_v19  ;;  %v255_v30 = vmax.f32 %v450_v20, %v451_v21  ;;  %v262_v31 = vmax.f32 %v454_v22, %v455_v23 }
  0x36   : > { %v214_v32 = vrot.slane %v213_v24, 4  ;;  %v221_v33 = vrot.slane %v220_v25, 4  ;;  %v228_v34 = vrot.slane %v227_v26, 4  ;;  %v235_v35 = vrot.slane %v234_v27, 4 }
  0x37   : > { %v242_v36 = vrot.slane %v241_v28, 4  ;;  %v249_v37 = vrot.slane %v248_v29, 4  ;;  %v256_v38 = vrot.slane %v255_v30, 4  ;;  %v263_v39 = vrot.slane %v262_v31, 4 }
  0x38   : > { %v215_v40 = vmax.f32 %v213_v24, %v214_v32  ;;  %v222_v41 = vmax.f32 %v220_v25, %v221_v33  ;;  %v229_v42 = vmax.f32 %v227_v26, %v228_v34  ;;  %v236_v43 = vmax.f32 %v234_v27, %v235_v35 }
  0x39   : > { %v243_v44 = vmax.f32 %v241_v28, %v242_v36  ;;  %v250_v45 = vmax.f32 %v248_v29, %v249_v37  ;;  %v257_v46 = vmax.f32 %v255_v30, %v256_v38  ;;  %v264_v47 = vmax.f32 %v262_v31, %v263_v39 }
  0x3a   : > { %v216_v48 = vrot.slane %v215_v40, 2  ;;  %v223_v49 = vrot.slane %v222_v41, 2  ;;  %v230_v50 = vrot.slane %v229_v42, 2  ;;  %v237_v51 = vrot.slane %v236_v43, 2 }
  0x3b   : > { %v244_v52 = vrot.slane %v243_v44, 2  ;;  %v251_v53 = vrot.slane %v250_v45, 2  ;;  %v258_v54 = vrot.slane %v257_v46, 2  ;;  %v265_v55 = vrot.slane %v264_v47, 2 }
  0x3c   : > { %v217_v56 = vmax.f32 %v215_v40, %v216_v48  ;;  %v224_v57 = vmax.f32 %v222_v41, %v223_v49  ;;  %v231_v58 = vmax.f32 %v229_v42, %v230_v50  ;;  %v238_v59 = vmax.f32 %v236_v43, %v237_v51 }
  0x3d   : > { %v245_v60 = vmax.f32 %v243_v44, %v244_v52  ;;  %v252_v61 = vmax.f32 %v250_v45, %v251_v53  ;;  %v259_v62 = vmax.f32 %v257_v46, %v258_v54  ;;  %v266_v63 = vmax.f32 %v264_v47, %v265_v55  ;;  %272 = sbr.rel (%p420_p0) target bundleno = 75 (0x4b), region = 32 }
  0x3e   : > { %v218_v0 = vrot.slane %v217_v56, 1  ;;  %v225_v1 = vrot.slane %v224_v57, 1  ;;  %v232_v2 = vrot.slane %v231_v58, 1  ;;  %v239_v3 = vrot.slane %v238_v59, 1 }
  0x3f   : > { %v246_v4 = vrot.slane %v245_v60, 1  ;;  %v253_v5 = vrot.slane %v252_v61, 1  ;;  %v260_v6 = vrot.slane %v259_v62, 1  ;;  %v267_v7 = vrot.slane %v266_v63, 1 }
  0x40   : > { %v219_v8 = vmax.f32 %v217_v56, %v218_v0  ;;  %v226_v9 = vmax.f32 %v224_v57, %v225_v1  ;;  %v233_v10 = vmax.f32 %v231_v58, %v232_v2  ;;  %v240_v11 = vmax.f32 %v238_v59, %v239_v3 }
  0x41   : > { %v247_v12 = vmax.f32 %v245_v60, %v246_v4  ;;  %v254_v13 = vmax.f32 %v252_v61, %v253_v5  ;;  %v261_v14 = vmax.f32 %v259_v62, %v260_v6  ;;  %v268_v15 = vmax.f32 %v266_v63, %v267_v7 }
  0x42   : > { %vm281_vm0 = vcmask 1041409   ;;  %vm283_vm1 = vcmask 1042434   ;;  %vm285_vm2 = vcmask 1043459   ;;  %vm287_vm3 = vcmask 1044484  }
  0x43   : > { %v282_v16 = vsel %vm281_vm0, %v226_v9, %v219_v8  ;;  %vm289_vm4 = vcmask 1045509   ;;  %vm291_vm5 = vcmask 1046534   ;;  %vm293_vm6 = vcmask 1047559  }
  0x44   : > { %v284_v17 = vsel %vm283_vm1, %v233_v10, %v282_v16 }
  0x45   : > { %v286_v18 = vsel %vm285_vm2, %v240_v11, %v284_v17 }
  0x46   : > { %v288_v19 = vsel %vm287_vm3, %v247_v12, %v286_v18 }
  0x47   : > { %v290_v20 = vsel %vm289_vm4, %v254_v13, %v288_v19 }
  0x48   : > { %v292_v21 = vsel %vm291_vm5, %v261_v14, %v290_v20 }
  0x49   : > { %v294_v22 = vsel %vm293_vm6, %v268_v15, %v292_v21 }
  0x4a   : > { %296 = vst [vmem:[%s728_s16] sm:$0xff] %v294_v22 }
  0x4b PF: > { %p421_p1 = scmp.le.s32.totalorder %s593_s9, 0 }
  0x4d   : > { %300 = sbr.rel (%p421_p1) target bundleno = 93 (0x5d), region = 36 }
  0x52   : > { %vm310_vm7 = vcmask 1041409   ;;  %vm312_vm8 = vcmask 1042434   ;;  %vm314_vm9 = vcmask 1043459   ;;  %vm316_vm10 = vcmask 1044484   ;;  %v301_v27 = vld [vmem:[%s728_s16] sm:$0xff] }
  0x53   : > { %v311_v23 = vsel %vm310_vm7, %v226_v9, %v219_v8  ;;  %vm318_vm11 = vcmask 1045509   ;;  %vm320_vm12 = vcmask 1046534   ;;  %vm322_vm13 = vcmask 1047559  }
  0x54   : > { %v313_v24 = vsel %vm312_vm8, %v233_v10, %v311_v23 }
  0x55   : > { %v315_v25 = vsel %vm314_vm9, %v240_v11, %v313_v24 }
  0x56   : > { %v317_v26 = vsel %vm316_vm10, %v247_v12, %v315_v25 }
  0x57   : > { %v319_v28 = vsel %vm318_vm11, %v254_v13, %v317_v26 }
  0x58   : > { %v321_v29 = vsel %vm320_vm12, %v261_v14, %v319_v28 }
  0x59   : > { %v323_v30 = vsel %vm322_vm13, %v268_v15, %v321_v29 }
  0x5a   : > { %v325_v31 = vmax.f32 %v301_v27, %v323_v30 }
  0x5c   : > { %326 = vst [vmem:[%s728_s16] sm:$0xff] %v325_v31 }
  0x5d PF: > { %s14_s13 = sadd.s32 1, %s609_s13   ;;  %s763_s6 = smov %s585_s7 }
  0x5e   : > { %p11_p2 = scmp.ge.s32.totalorder %s14_s13, 8   ;;  %s764_s7 = smov %s589_s8 }
  0x5f   : > { %s765_s8 = smov %s691_s23  ;;  %s766_s9 = smov %s601_s11 }
  0x60   : > { %s767_s10 = smov %s605_s12  ;;  %s768_s11 = smov %s771_s14 }
  0x61   : > { %s769_s12 = smov %s775_s15  ;;  %13 = sbr.rel (!%p11_p2) target bundleno = 5 (0x5), region = 77 }
  0x66   :  { %346 = vsyncpa [#allocation3], 1 }
  0x67   :  { %348 = vsyncpa [#allocation3 + $0x1], 1 }

// kernel: sst_network_ablation_forward.5
= control target key start
LH: loop header
LB: loop body
LE: loop exit
PB: predicated region body
PF: predicated region fallthrough
CT: control target
= control target key end

     0   :  { %s462_s0 = inlined_call_operand.vmem [shape: f32[32,128], index: 0, kind: input, shape index: {}]   ;;  %s463_s1 = inlined_call_operand.vmem [shape: f32[128,128], index: 1, kind: input, shape index: {}]   ;;  %s464_s2 = inlined_call_operand.vmem [shape: f32[1,128], index: 2, kind: input, shape index: {}]   ;;  %s465_s3 = inlined_call_operand.<no memory space> [shape: f32[1,1], index: 3, kind: input, shape index: {}]   ;;  %s466_s4 = inlined_call_operand.vmem [shape: f32[16,16], index: 4, kind: output, shape index: {0}]   ;;  %s467_s5 = inlined_call_operand.hbm [shape: f32[1,1], index: 5, kind: output, shape index: {1}]  }
   0x1   :  { %v40_v0 = vld [vmem:[%s463_s1 + $0x78] sm:$0xff]  ;;  %v39_v1 = vld [vmem:[%s463_s1 + $0x70] sm:$0xff]  ;;  %v38_v2 = vld [vmem:[%s463_s1 + $0x68] sm:$0xff] }
   0x2   :  { %259 = vmatpush.msra.mxu3 %v40_v0  ;;  %45 = vmatpush.msra.mxu0 %v40_v0  ;;  %v37_v3 = vld [vmem:[%s463_s1 + $0x60] sm:$0xff]  ;;  %v36_v4 = vld [vmem:[%s463_s1 + $0x58] sm:$0xff] }
   0x3   :  { %258 = vmatpush.msra.mxu2 %v40_v0 }
   0x4   :  { %261 = vmatpush.msra.mxu3 %v39_v1  ;;  %46 = vmatpush.msra.mxu0 %v39_v1 }
   0x5   :  { %260 = vmatpush.msra.mxu2 %v39_v1 }
   0x6   :  { %263 = vmatpush.msra.mxu3 %v38_v2  ;;  %47 = vmatpush.msra.mxu0 %v38_v2 }
   0x7   :  { %262 = vmatpush.msra.mxu2 %v38_v2 }
   0x8   :  { %12 = vsyncpa [#allocation4], 0  ;;  %265 = vmatpush.msra.mxu3 %v37_v3  ;;  %48 = vmatpush.msra.mxu0 %v37_v3  ;;  %v35_v5 = vld [vmem:[%s463_s1 + $0x50] sm:$0xff]  ;;  %v34_v6 = vld [vmem:[%s463_s1 + $0x48] sm:$0xff]  ;;  %v104_v29 = vlaneseq  ;;  %v98_v30 = vstv %s465_s3  ;;  %vm101_vm0 = vcmask 130048   ;;  %v344_v37 = vmov 0.0  }
   0x9   :  { %264 = vmatpush.msra.mxu2 %v37_v3  ;;  %v33_v7 = vld [vmem:[%s463_s1 + $0x40] sm:$0xff]  ;;  %v32_v8 = vld [vmem:[%s463_s1 + $0x38] sm:$0xff]  ;;  %v31_v9 = vld [vmem:[%s463_s1 + $0x30] sm:$0xff]  ;;  %vm210_vm3 = vcmask 122880   ;;  %vm187_vm5 = vcmask 7168   ;;  %s346_s20 = smov [#allocation3]  }
   0xa   :  { %267 = vmatpush.msra.mxu3 %v36_v4  ;;  %49 = vmatpush.msra.mxu0 %v36_v4  ;;  %v30_v10 = vld [vmem:[%s463_s1 + $0x28] sm:$0xff]  ;;  %v29_v11 = vld [vmem:[%s463_s1 + $0x20] sm:$0xff]  ;;  %v28_v12 = vld [vmem:[%s463_s1 + $0x18] sm:$0xff]  ;;  %v105_v31 = vshrl.u32 %v104_v29, 7  ;;  %v108_v32 = vand.u32 127, %v104_v29  ;;  %s243_s21 = sshll.u32 %s346_s20, 4  ;;  %s244_s21 = int_to_ptr.vmem [resolvable:$true] %s243_s21 }
   0xb   :  { %266 = vmatpush.msra.mxu2 %v36_v4  ;;  %v27_v13 = vld [vmem:[%s463_s1 + $0x10] sm:$0xff]  ;;  %v26_v14 = vld [vmem:[%s463_s1 + $0x8] sm:$0xff]  ;;  %v25_v15 = vld [vmem:[%s463_s1] sm:$0xff]  ;;  %s245_s25 = sshll.u32 %s467_s5, 4  ;;  %vm234_vm6 = vcmask 0   ;;  %s246_s25 = int_to_ptr.hbm [resolvable:$true] %s245_s25 }
   0xc   :  { %269 = vmatpush.msra.mxu3 %v35_v5  ;;  %50 = vmatpush.msra.mxu0 %v35_v5  ;;  %v23_v16 = vld [vmem:[%s462_s0 + $0x10] sm:$0xff]  ;;  %v21_v17 = vld [vmem:[%s462_s0] sm:$0xff]  ;;  %v22_v18 = vld [vmem:[%s462_s0 + $0x8] sm:$0xff]  ;;  %v106_v35 = vadd.s32 8, %v105_v31  ;;  %vm109_vm1 = vcmp.eq.s32.totalorder %v105_v31, %v108_v32 }
   0xd   :  { %268 = vmatpush.msra.mxu2 %v35_v5  ;;  %v24_v19 = vld [vmem:[%s462_s0 + $0x18] sm:$0xff]  ;;  %v301_v21 = vld [vmem:[%s464_s2] ss:$0 sm:$0xff]  ;;  %v256_v38 = vsel %vm109_vm1, 1.0, %v344_v37 }
   0xe   :  { %271 = vmatpush.msra.mxu3 %v34_v6  ;;  %51 = vmatpush.msra.mxu0 %v34_v6  ;;  %vm110_vm2 = vcmp.eq.s32.totalorder %v106_v35, %v108_v32 }
   0xf   :  { %270 = vmatpush.msra.mxu2 %v34_v6  ;;  %v257_v40 = vsel %vm110_vm2, 1.0, %v344_v37 }
  0x10   :  { %273 = vmatpush.msra.mxu3 %v33_v7  ;;  %52 = vmatpush.msra.mxu0 %v33_v7 }
  0x11   :  { %272 = vmatpush.msra.mxu2 %v33_v7 }
  0x12   :  { %275 = vmatpush.msra.mxu3 %v32_v8  ;;  %53 = vmatpush.msra.mxu0 %v32_v8 }
  0x13   :  { %274 = vmatpush.msra.mxu2 %v32_v8 }
  0x14   :  { %277 = vmatpush.msra.mxu3 %v31_v9  ;;  %54 = vmatpush.msra.mxu0 %v31_v9 }
  0x15   :  { %276 = vmatpush.msra.mxu2 %v31_v9 }
  0x16   :  { %279 = vmatpush.msra.mxu3 %v30_v10  ;;  %55 = vmatpush.msra.mxu0 %v30_v10 }
  0x17   :  { %278 = vmatpush.msra.mxu2 %v30_v10  ;;  %v345_v10 = vmov 16.0  }
  0x18   :  { %281 = vmatpush.msra.mxu3 %v29_v11  ;;  %56 = vmatpush.msra.mxu0 %v29_v11 }
  0x19   :  { %280 = vmatpush.msra.mxu2 %v29_v11 }
  0x1a   :  { %283 = vmatpush.msra.mxu3 %v28_v12  ;;  %57 = vmatpush.msra.mxu0 %v28_v12 }
  0x1b   :  { %282 = vmatpush.msra.mxu2 %v28_v12 }
  0x1c   :  { %285 = vmatpush.msra.mxu3 %v27_v13  ;;  %58 = vmatpush.msra.mxu0 %v27_v13 }
  0x1d   :  { %284 = vmatpush.msra.mxu2 %v27_v13 }
  0x1e   :  { %287 = vmatpush.msra.mxu3 %v26_v14  ;;  %59 = vmatpush.msra.mxu0 %v26_v14 }
  0x1f   :  { %286 = vmatpush.msra.mxu2 %v26_v14 }
  0x20   :  { %289 = vmatpush.msra.mxu3 %v25_v15  ;;  %60 = vmatpush.msra.mxu0 %v25_v15 }
  0x21   :  { %67 = vmatmul.f32.vlgmr.msra.gmra.mxu3 %v23_v16  ;;  %61 = vmatmul.f32.vlgmr.msra.gmra.mxu0 %v21_v17 }
  0x22   :  { %288 = vmatpush.msra.mxu2 %v25_v15 }
  0x23   :  { %64 = vmatmul.f32.vlgmr.msra.gmra.mxu2 %v22_v18 }
  0x29   :  { %70 = vmatmul.f32.gmra.mxu3 %v24_v19 }
  0x9e   :  { %v62_v24 = vpop.f32.mrf.mxu0 }
  0x9f   :  { %v63_v26 = vadd.f32 %v301_v21, %v62_v24 }
  0xa4   :  { %v68_v20 = vpop.f32.mrf.mxu3 }
  0xa5   :  { %v69_v25 = vadd.f32 %v301_v21, %v68_v20 }
  0xa6   :  { %v65_v27 = vpop.f32.mrf.mxu2 }
  0xa7   :  { %v66_v28 = vadd.f32 %v301_v21, %v65_v27 }
  0xac   :  { %v71_v22 = vpop.f32.mrf.mxu3 }
  0xad   :  { %v72_v23 = vadd.f32 %v301_v21, %v71_v22 }
  0xaf   :  { %89 = vmatpush.xpose.msra.mxu1 %v72_v23 }
  0xb3   :  { %90 = vmatpush.xpose.msra.mxu1 %v69_v25 }
  0xb6   :  { %91 = vmatmul.f32.vlgmr.msra.gmra.mxu1 %v63_v26 }
  0xbe   :  { %94 = vmatmul.f32.gmra.mxu1 %v66_v28 }
 0x133   :  { %v92_v33 = vpop.f32.mrf.mxu1 }
 0x134   :  { %v99_v34 = vmul.f32 %v98_v30, %v92_v33 }
 0x136   :  { %102 = vst.msk [vmem:[%s466_s4] sm:$0xff] %vm101_vm0, %v99_v34  ;;  %v138_v36 = vsel %vm101_vm0, %v99_v34, -inf  ;;  %v115_v42 = vmul.f32 %v256_v38, %v99_v34 }
 0x137   :  { %139 = vmax.xlane.f32.xlu0 %v138_v36 }
 0x138   :  { %v117_v46 = vsel %vm101_vm0, %v115_v42, 0.0 }
 0x13b   :  { %v95_v39 = vpop.f32.mrf.mxu1 }
 0x13c   :  { %v100_v41 = vmul.f32 %v98_v30, %v95_v39 }
 0x13e   :  { %103 = vst.msk [vmem:[%s466_s4 + $0x8] sm:$0xff] %vm101_vm0, %v100_v41  ;;  %v141_v43 = vsel %vm101_vm0, %v100_v41, -inf  ;;  %v116_v44 = vmul.f32 %v257_v40, %v100_v41 }
 0x13f   :  { %142 = vmax.xlane.f32.xlu0 %v141_v43  ;;  %v162_v45 = vmax.f32 %v138_v36, %v141_v43 }
 0x140   :  { %v118_v47 = vsel %vm101_vm0, %v116_v44, 0.0 }
 0x141   :  { %v163_v48 = vrot.slane %v162_v45, 4  ;;  %v119_v49 = vadd.f32 %v118_v47, %v117_v46 }
 0x143   :  { %v164_v50 = vmax.f32 %v162_v45, %v163_v48  ;;  %120 = vadd.xlane.f32.xlu2 %v119_v49 }
 0x145   :  { %v165_v51 = vrot.slane %v164_v50, 2 }
 0x147   :  { %v166_v52 = vmax.f32 %v164_v50, %v165_v51 }
 0x149   :  { %v167_v53 = vrot.slane %v166_v52, 1 }
 0x14b   :  { %v168_v54 = vmax.f32 %v166_v52, %v167_v53 }
 0x14d   :  { %v169_v55 = vsub.f32 %v99_v34, %v168_v54  ;;  %v170_v56 = vsub.f32 %v100_v41, %v168_v54 }
 0x14f   :  { %v171_v57 = vmul.f32 1.442695, %v169_v55  ;;  %v173_v58 = vmul.f32 1.442695, %v170_v56 }
 0x151   :  { %302 = vpow2.f32 %v171_v57 }
 0x152   :  { %304 = vpow2.f32 %v173_v58 }
 0x157   :  { %v303_v59 = vpop.eup %302 }
 0x158   :  { %v305_v60 = vpop.eup %304  ;;  %v175_v61 = vsel %vm101_vm0, %v303_v59, 0.0 }
 0x159   :  { %v176_v62 = vsel %vm101_vm0, %v305_v60, 0.0 }
 0x15a   :  { %v177_v63 = vadd.f32 %v176_v62, %v175_v61 }
 0x15c   :  { %v178_v0 = vrot.slane %v177_v63, 4 }
 0x15e   :  { %v179_v1 = vadd.f32 %v178_v0, %v177_v63 }
 0x160   :  { %v180_v2 = vrot.slane %v179_v1, 2 }
 0x162   :  { %v181_v3 = vadd.f32 %v180_v2, %v179_v1 }
 0x164   :  { %v182_v4 = vrot.slane %v181_v3, 1 }
 0x166   :  { %v183_v5 = vadd.f32 %v182_v4, %v181_v3 }
 0x168   :  { %306 = vlog2.f32 %v183_v5 }
 0x169   :  { %308 = vrcp.f32 %v345_v10 }
 0x16e   :  { %v307_v6 = vpop.eup %306 }
 0x16f   :  { %v185_v7 = vmul.f32 0.6931472, %v307_v6  ;;  %v309_v14 = vpop.eup %308 }
 0x170   :  { %v130_v15 = vmul.f32 16.0, %v309_v14  ;;  %vm134_vm4 = vweird.f32 %v309_v14 }
 0x171   :  { %v186_v8 = vadd.f32 %v185_v7, %v168_v54 }
 0x172   :  { %v131_v20 = vsub.f32 1.0, %v130_v15 }
 0x173   :  { %v211_v9 = vsel %vm210_vm3, %v186_v8, 0.0 }
 0x174   :  { %212 = vadd.xlane.f32.xlu0 %v211_v9  ;;  %v132_v25 = vmul.f32 %v309_v14, %v131_v20 }
 0x176   :  { %v133_v29 = vadd.f32 %v309_v14, %v132_v25 }
 0x178   :  { %v135_v33 = vsel %vm134_vm4, %v309_v14, %v133_v29 }
 0x1aa   :  { %v140_v11 = vpop.xlane.xlu0 %139 }
 0x1ab   :  { %v144_v12 = vsub.f32 %v99_v34, %v140_v11 }
 0x1ad   :  { %v146_v13 = vmul.f32 1.442695, %v144_v12 }
 0x1af   :  { %310 = vpow2.f32 %v146_v13 }
 0x1b2   :  { %v143_v16 = vpop.xlane.xlu0 %142 }
 0x1b3   :  { %v145_v17 = vsub.f32 %v100_v41, %v143_v16 }
 0x1b5   :  { %v311_v18 = vpop.eup %310  ;;  %v148_v19 = vmul.f32 1.442695, %v145_v17 }
 0x1b6   :  { %v121_v21 = vpop.xlane.xlu2 %120  ;;  %v150_v22 = vsel %vm101_vm0, %v311_v18, 0.0 }
 0x1b7   :  { %312 = vpow2.f32 %v148_v19  ;;  %v122_v23 = vrot.slane %v121_v21, 4  ;;  %151 = vadd.xlane.f32.xlu1 %v150_v22 }
 0x1b9   :  { %v123_v24 = vadd.f32 %v122_v23, %v121_v21 }
 0x1bb   :  { %v124_v26 = vrot.slane %v123_v24, 2 }
 0x1bd   :  { %v313_v27 = vpop.eup %312  ;;  %v125_v28 = vadd.f32 %v124_v26, %v123_v24 }
 0x1be   :  { %v153_v30 = vsel %vm101_vm0, %v313_v27, 0.0 }
 0x1bf   :  { %154 = vadd.xlane.f32.xlu1 %v153_v30  ;;  %v126_v31 = vrot.slane %v125_v28, 1 }
 0x1c1   :  { %v127_v32 = vadd.f32 %v126_v31, %v125_v28 }
 0x1c3   :  { %290 = vpush %v127_v32 }
 0x1c4   :  { %292 = vpush %v135_v33 }
 0x1e7   :  { %v213_v45 = vpop.xlane.xlu0 %212 }
 0x1e8   :  { %v214_v46 = vrot.slane %v213_v45, 4 }
 0x1ea   :  { %v215_v47 = vadd.f32 %v214_v46, %v213_v45 }
 0x1ec   :  { %v216_v48 = vrot.slane %v215_v47, 2 }
 0x1ee   :  { %v217_v52 = vadd.f32 %v216_v48, %v215_v47 }
 0x1f0   :  { %v218_v55 = vrot.slane %v217_v52, 1 }
 0x1f2   :  { %v219_v58 = vadd.f32 %v218_v55, %v217_v52 }
 0x1f4   :  { %s291_s4 = spop %290 }
 0x1f5   :  { %s293_s12 = spop %292 }
 0x1f6   :  { %s137_s13 = smul.f32 %s293_s12, %s291_s4 }
 0x22a   :  { %v152_v34 = vpop.xlane.xlu1 %151 }
 0x22b   :  { %314 = vlog2.f32 %v152_v34 }
 0x231   :  { %v315_v36 = vpop.eup %314 }
 0x232   :  { %v155_v35 = vpop.xlane.xlu1 %154  ;;  %v157_v37 = vmul.f32 0.6931472, %v315_v36 }
 0x233   :  { %316 = vlog2.f32 %v155_v35 }
 0x234   :  { %v160_v39 = vadd.f32 %v157_v37, %v140_v11 }
 0x236   :  { %v188_v42 = vsel %vm187_vm5, %v160_v39, 0.0 }
 0x239   :  { %v317_v38 = vpop.eup %316 }
 0x23a   :  { %v159_v40 = vmul.f32 0.6931472, %v317_v38 }
 0x23c   :  { %v161_v41 = vadd.f32 %v159_v40, %v143_v16 }
 0x23e   :  { %v189_v43 = vsel %vm187_vm5, %v161_v41, 0.0 }
 0x23f   :  { %v190_v44 = vadd.f32 %v189_v43, %v188_v42 }
 0x241   :  { %191 = vadd.xlane.f32.xlu2 %v190_v44 }
 0x2b4   :  { %v192_v49 = vpop.xlane.xlu2 %191 }
 0x2b5   :  { %v193_v50 = vrot.slane %v192_v49, 4 }
 0x2b7   :  { %v194_v51 = vadd.f32 %v193_v50, %v192_v49 }
 0x2b9   :  { %v195_v53 = vrot.slane %v194_v51, 2 }
 0x2bb   :  { %v196_v54 = vadd.f32 %v195_v53, %v194_v51 }
 0x2bd   :  { %v197_v56 = vrot.slane %v196_v54, 1 }
 0x2bf   :  { %v198_v57 = vadd.f32 %v197_v56, %v196_v54 }
 0x2c1   :  { %294 = vpush %v198_v57 }
 0x2c2   :  { %296 = vpush %v219_v58 }
 0x2f2   :  { %s295_s14 = spop %294 }
 0x2f3   :  { %s208_s15 = smul.f32 %s295_s14, %s293_s12  ;;  %s297_s16 = spop %296 }
 0x2f4   :  { %s229_s17 = smul.f32 %s297_s16, %s293_s12 }
 0x2f5   :  { %s209_s18 = ssub.f32 %s208_s15, %s137_s13 }
 0x2f6   :  { %s230_s19 = ssub.f32 %s229_s17, %s137_s13 }
 0x2f8   :  { %s231_s22 = sadd.f32 %s230_s19, %s209_s18 }
 0x2fa   :  { %s232_s26 = smul.f32 0.5, %s231_s22 }
 0x2fc   :  { %v233_v59 = vstv %s232_s26 }
 0x2fd   :  { %235 = vst.msk [vmem:[#allocation3] sm:$0x1] %vm234_vm6, %v233_v59 }
 0x2fe   :  { %248 = dma.vmem_to_hbm [thread:$0]  %s244_s21, 16, %s246_s25, [#allocation4]  }
 0x2ff   :  { %342 = dma.done.wait [#allocation4], 16  }
 0x300   :  { %343 = vsyncadd [#allocation4], 4294967280 }
 0x301   :  { %255 = vsyncpa [#allocation4], 1 }

</bundles_post_ra>
